<compile_context>
chip_gen: v7x
topology: tpu7x:2x2x1
jax: 0.10.0
libtpu: 0.0.40
codegen_flags: <defaults>
</compile_context>

<pallas_src>
import functools

import jax
import jax.numpy as jnp
from jax.experimental import pallas as pl
from jax.experimental.pallas import tpu as pltpu


def _patch_embed_kernel(p_ref, w_ref, par_ref, o_ref, *, eps):
    """p_ref: (TM, K) bf16 im2col rows; w_ref: (K, Cout) bf16;
    par_ref: (3, Cout) f32 rows = [conv_bias, ln_gamma, ln_beta]; o_ref: (TM, Cout)."""
    # Strided conv == one MXU matmul over the fused (kh, kw, Cin) axis, f32 acc.
    acc = jnp.dot(p_ref[...], w_ref[...], preferred_element_type=jnp.float32)
    params = par_ref[...]
    y = acc + params[0:1, :]                                # conv bias (1, Cout) bcast

    # LayerNorm over embed_dim (last axis), two-pass, f32 stats.
    mu = jnp.mean(y, axis=-1, keepdims=True)
    yc = y - mu
    var = jnp.mean(yc * yc, axis=-1, keepdims=True)
    inv = jax.lax.rsqrt(var + eps)
    out = yc * inv * params[1:2, :] + params[2:3, :]
    o_ref[...] = out.astype(o_ref.dtype)


def overlap_patch_embed(x_nchw, w_oihw, b_conv, ln_gamma, ln_beta,
                        *, stride=4, eps=1e-5, tm=1024, out_dtype=jnp.bfloat16):
    """x_nchw: (N, Cin, H, W); conv weight OIHW. Returns ((N, Ho*Wo, Cout), Ho, Wo)."""
    N, Cin, H, W = x_nchw.shape
    Cout, _, kh, kw = w_oihw.shape
    ph, pw = kh // 2, kw // 2
    Ho = (H + 2 * ph - kh) // stride + 1
    Wo = (W + 2 * pw - kw) // stride + 1
    K = kh * kw * Cin
    M = N * Ho * Wo

    # ---- im2col (layout plumbing only, zero FLOPs), entirely in bf16 ----
    x_nhwc = jnp.transpose(x_nchw.astype(jnp.bfloat16), (0, 2, 3, 1))
    xp = jnp.pad(x_nhwc, ((0, 0), (ph, ph), (pw, pw), (0, 0)))
    taps = []
    for dy in range(kh):
        for dx in range(kw):
            taps.append(jax.lax.slice(
                xp, (0, dy, dx, 0),
                (N, dy + stride * (Ho - 1) + 1, dx + stride * (Wo - 1) + 1, Cin),
                (1, stride, stride, 1)))                    # (N, Ho, Wo, Cin) bf16
    patches = jnp.stack(taps, axis=3).reshape(M, K)         # (M, K) bf16

    # Conv weight -> (K, Cout), tap-major ordering matching the patch rows.
    w_kc = jnp.transpose(w_oihw, (2, 3, 1, 0)).reshape(K, Cout).astype(jnp.bfloat16)

    # Pack the three per-channel vectors into one small f32 operand.
    params = jnp.stack([b_conv.astype(jnp.float32),
                        ln_gamma.astype(jnp.float32),
                        ln_beta.astype(jnp.float32)], axis=0)        # (3, Cout)

    # Row tile: multiple of 16 (bf16 (16,128) packing); ragged last block is
    # handled by Pallas store masking -- no padding / slicing copies.
    tm_blk = min(tm, max(16, (M // 16) * 16))
    grid_m = pl.cdiv(M, tm_blk)

    kernel = functools.partial(_patch_embed_kernel, eps=eps)
    out2d = pl.pallas_call(
        kernel,
        out_shape=jax.ShapeDtypeStruct((M, Cout), out_dtype),
        grid_spec=pltpu.PrefetchScalarGridSpec(
            num_scalar_prefetch=0,
            grid=(grid_m,),
            in_specs=[
                pl.BlockSpec((tm_blk, K), lambda m: (m, 0)),    # im2col row tile
                pl.BlockSpec(memory_space=pltpu.VMEM),          # conv weight (K, Cout)
                pl.BlockSpec(memory_space=pltpu.VMEM),          # (3, Cout) bias/gamma/beta
            ],
            out_specs=pl.BlockSpec((tm_blk, Cout), lambda m: (m, 0)),
        ),
        # Single row axis marked parallel; on v7x, if a trace shows one TC idle,
        # switch to pltpu.CORE_PARALLEL to guarantee both TensorCores split it.
        compiler_params=pltpu.CompilerParams(
            dimension_semantics=("parallel",)),
    )(patches, w_kc, params)

    return out2d.reshape(N, Ho * Wo, Cout), Ho, Wo


def reference(x_nchw, w_oihw, b_conv, ln_g, ln_b, *, stride=4, eps=1e-5):
    """Pure-JAX f32 reference matching the PyTorch module forward."""
    Cout, Cin, kh, kw = w_oihw.shape
    conv = jax.lax.conv_general_dilated(
        x_nchw, w_oihw, window_strides=(stride, stride),
        padding=((kh // 2, kh // 2), (kw // 2, kw // 2)),
        dimension_numbers=("NCHW", "OIHW", "NCHW"))
    conv = conv + b_conv[None, :, None, None]
    N, C, Ho, Wo = conv.shape
    xf = jnp.transpose(conv.reshape(N, C, Ho * Wo), (0, 2, 1))   # (N, HW, C)
    mu = xf.mean(-1, keepdims=True)
    var = ((xf - mu) ** 2).mean(-1, keepdims=True)
    y = (xf - mu) / jnp.sqrt(var + eps) * ln_g + ln_b
    return y, Ho, Wo


if __name__ == "__main__":
    # Small shapes consistent with the module: 16x16 image, 7x7 patch, stride 4,
    # in_chans=3, embed_dim=128 (keeps the embedding lane-dense).
    N, Cin, H, W = 2, 3, 16, 16
    embed_dim, patch, stride = 128, 7, 4

    key = jax.random.PRNGKey(0)
    kx, kw_, kb, kg, kbt = jax.random.split(key, 5)

    x = jax.random.normal(kx, (N, Cin, H, W), jnp.float32)
    # Conv2d init per module: normal(0, sqrt(2/fan_out)); bias zero (perturbed to test).
    fan_out = patch * patch * embed_dim
    w = jnp.sqrt(2.0 / fan_out) * jax.random.normal(
        kw_, (embed_dim, Cin, patch, patch), jnp.float32)
    b = 0.02 * jax.random.normal(kb, (embed_dim,), jnp.float32)
    # LayerNorm init: weight=1, bias=0 (perturbed deterministically to test affine path).
    gamma = 1.0 + 0.1 * jax.random.normal(kg, (embed_dim,), jnp.float32)
    beta = 0.1 * jax.random.normal(kbt, (embed_dim,), jnp.float32)

    out, Ho, Wo = overlap_patch_embed(x, w, b, gamma, beta, stride=stride)
    out = jax.block_until_ready(out)

    ref, Ho_r, Wo_r = reference(x, w, b, gamma, beta, stride=stride)
    ref = jax.block_until_ready(ref)

    assert (Ho, Wo) == (Ho_r, Wo_r)
    assert out.shape == (N, Ho * Wo, embed_dim)
    assert out.dtype == jnp.bfloat16
    # bf16 matmul operands + bf16 output with f32 accumulation / LN stats.
    max_err = float(jnp.max(jnp.abs(out.astype(jnp.float32) - ref)))
    assert max_err < 5e-2, max_err
    print("KERNEL_OK")
</pallas_src>

<mosaic_0001>
module attributes {stable_mosaic.version = 11 : i64} {
  func.func @_patch_embed_kernel(%arg0: i32, %arg1: memref<32x147xbf16, #tpu.memory_space<vmem>>, %arg2: memref<147x128xbf16, #tpu.memory_space<vmem>>, %arg3: memref<3x128xf32, #tpu.memory_space<vmem>>, %arg4: memref<32x128xbf16, #tpu.memory_space<vmem>>) attributes {dimension_semantics = [#tpu.dimension_semantics<parallel>], iteration_bounds = array<i64: 1>, scalar_prefetch = 0 : i64, scratch_operands = 0 : i64, tpu.core_type = #tpu.core_type<tc>, window_params = [{transform_indices = @transform_0, window_bounds = array<i64: 32, 147>}, {pipeline_mode = #tpu.pipeline_mode<synchronous>, transform_indices = @transform_1, window_bounds = array<i64: 147, 128>}, {pipeline_mode = #tpu.pipeline_mode<synchronous>, transform_indices = @transform_2, window_bounds = array<i64: 3, 128>}, {transform_indices = @transform_3, window_bounds = array<i64: 32, 128>}]} {
    %c0 = arith.constant 0 : index
    %c0_0 = arith.constant 0 : index
    %0 = vector.load %arg1[%c0, %c0_0] : memref<32x147xbf16, #tpu.memory_space<vmem>>, vector<32x147xbf16>
    %c0_1 = arith.constant 0 : index
    %c0_2 = arith.constant 0 : index
    %1 = vector.load %arg2[%c0_1, %c0_2] : memref<147x128xbf16, #tpu.memory_space<vmem>>, vector<147x128xbf16>
    %cst = arith.constant dense<0.000000e+00> : vector<32x128xf32>
    %2 = tpu.matmul %0, %1, %cst {dimension_numbers = #tpu.dot_dimension_numbers<[1], [0], [0], [1], [0, 0, 1, 1], [], []>} : vector<32x147xbf16>, vector<147x128xbf16>, vector<32x128xf32> -> vector<32x128xf32>
    %c0_3 = arith.constant 0 : index
    %c0_4 = arith.constant 0 : index
    %3 = vector.load %arg3[%c0_3, %c0_4] : memref<3x128xf32, #tpu.memory_space<vmem>>, vector<3x128xf32>
    %4 = vector.extract_strided_slice %3 {offsets = [0, 0], sizes = [1, 128], strides = [1, 1]} : vector<3x128xf32> to vector<1x128xf32>
    %5 = vector.broadcast %4 : vector<1x128xf32> to vector<32x128xf32>
    %6 = arith.addf %2, %5 : vector<32x128xf32>
    %cst_5 = arith.constant dense<0.000000e+00> : vector<32xf32>
    %7 = vector.multi_reduction <add>, %6, %cst_5 [1] : vector<32x128xf32> to vector<32xf32>
    %8 = vector.shape_cast %7 : vector<32xf32> to vector<32x1xf32>
    %cst_6 = arith.constant 1.280000e+02 : f32
    %9 = vector.broadcast %cst_6 : f32 to vector<32x1xf32>
    %10 = arith.divf %8, %9 : vector<32x1xf32>
    %11 = vector.broadcast %10 : vector<32x1xf32> to vector<32x128xf32>
    %12 = arith.subf %6, %11 : vector<32x128xf32>
    %13 = arith.mulf %12, %12 : vector<32x128xf32>
    %cst_7 = arith.constant dense<0.000000e+00> : vector<32xf32>
    %14 = vector.multi_reduction <add>, %13, %cst_7 [1] : vector<32x128xf32> to vector<32xf32>
    %15 = vector.shape_cast %14 : vector<32xf32> to vector<32x1xf32>
    %cst_8 = arith.constant 1.280000e+02 : f32
    %16 = vector.broadcast %cst_8 : f32 to vector<32x1xf32>
    %17 = arith.divf %15, %16 : vector<32x1xf32>
    %cst_9 = arith.constant 9.99999974E-6 : f32
    %18 = vector.broadcast %cst_9 : f32 to vector<32x1xf32>
    %19 = arith.addf %17, %18 : vector<32x1xf32>
    %20 = math.rsqrt %19 : vector<32x1xf32>
    %21 = vector.broadcast %20 : vector<32x1xf32> to vector<32x128xf32>
    %22 = arith.mulf %12, %21 : vector<32x128xf32>
    %23 = vector.extract_strided_slice %3 {offsets = [1, 0], sizes = [1, 128], strides = [1, 1]} : vector<3x128xf32> to vector<1x128xf32>
    %24 = vector.broadcast %23 : vector<1x128xf32> to vector<32x128xf32>
    %25 = arith.mulf %22, %24 : vector<32x128xf32>
    %26 = vector.extract_strided_slice %3 {offsets = [2, 0], sizes = [1, 128], strides = [1, 1]} : vector<3x128xf32> to vector<1x128xf32>
    %27 = vector.broadcast %26 : vector<1x128xf32> to vector<32x128xf32>
    %28 = arith.addf %25, %27 : vector<32x128xf32>
    %29 = arith.truncf %28 : vector<32x128xf32> to vector<32x128xbf16>
    %c0_10 = arith.constant 0 : index
    %c0_11 = arith.constant 0 : index
    %30 = vector.load %arg4[%c0_10, %c0_11] : memref<32x128xbf16, #tpu.memory_space<vmem>>, vector<32x128xbf16>
    tpu.vector_store %arg4[%c0_10, %c0_11], %29 {strides = array<i32>} : memref<32x128xbf16, #tpu.memory_space<vmem>>, vector<32x128xbf16>,
    return
  }
  func.func @transform_0(%arg0: i32) -> (i32, i32) {
    %c0_i32 = arith.constant 0 : i32
    %c0_i32_0 = arith.constant 0 : i32
    return %arg0, %c0_i32 : i32, i32
  }
  func.func @transform_1(%arg0: i32) -> (i32, i32) {
    %c0_i32 = arith.constant 0 : i32
    %c0_i32_0 = arith.constant 0 : i32
    %c0_i32_1 = arith.constant 0 : i32
    return %c0_i32, %c0_i32_0 : i32, i32
  }
  func.func @transform_2(%arg0: i32) -> (i32, i32) {
    %c0_i32 = arith.constant 0 : i32
    %c0_i32_0 = arith.constant 0 : i32
    %c0_i32_1 = arith.constant 0 : i32
    return %c0_i32, %c0_i32_0 : i32, i32
  }
  func.func @transform_3(%arg0: i32) -> (i32, i32) {
    %c0_i32 = arith.constant 0 : i32
    %c0_i32_0 = arith.constant 0 : i32
    return %arg0, %c0_i32 : i32, i32
  }
}

</mosaic_0001>

<bundles_post_ra>
// kernel: tpu_custom_call.1
= control target key start
LH: loop header
LB: loop body
LE: loop exit
PB: predicated region body
PF: predicated region fallthrough
CT: control target
= control target key end

     0   :  { %8 = vsyncpa [#allocation3], 0  ;;  %s548_s0 = inlined_call_operand.hbm [shape: bf16[32,147], index: 0, kind: input, shape index: {}]   ;;  %s549_s1 = inlined_call_operand.hbm [shape: bf16[147,128], index: 1, kind: input, shape index: {}]   ;;  %s550_s2 = inlined_call_operand.vmem [shape: f32[3,128], index: 2, kind: input, shape index: {}]   ;;  %s551_s3 = inlined_call_operand.hbm [shape: bf16[32,128], index: 3, kind: output, shape index: {}]  }
   0x1   :  { %9 = vsyncpa [#allocation6], 0 }
   0x2   :  { %10 = vsyncpa [#allocation4], 0  ;;  %s469_s12 = smov [#allocation2]   ;;  %s397_s16 = scalar_lea.hbm %s548_s0, 512 }
   0x3   :  { %s16_s13 = sshll.u32 %s469_s12, 4  ;;  %p398_p0 = scmp.ne.s32.totalorder %s548_s0, %s397_s16  ;;  %s17_s13 = int_to_ptr.vmem [resolvable:$true] %s16_s13 }
   0x4   :  { %p401_p1 = scmp.lt.u32.totalorder %s397_s16, %s548_s0 }
   0x6   :  { %p403_p2 = pnand %p401_p1, %p398_p0 }
   0x8   :  { %406 = shalt.err (!%p403_p2)
}
   0x9   :  { %s407_s21 = scalar_lea.vmem %s17_s13, 512  ;;  %p412_p4 = scmp.lt.s32.totalorder %s17_s13, %s17_s13 }
   0xa   :  { %p408_p3 = scmp.ne.s32.totalorder %s17_s13, %s407_s21  ;;  %p413_p5 = scmp.lt.s32.totalorder %s407_s21, %s407_s21 }
   0xc   :  { %p414_p6 = por %p413_p5, %p412_p4 }
   0xe   :  { %p415_p7 = pnand %p414_p6, %p408_p3 }
  0x10   :  { %418 = shalt.err (!%p415_p7)
}
  0x11   :  { %s470_s22 = smov 128   ;;  %s471_s23 = smov 8  }
  0x12   :  { %22 = dma.hbm_to_vmem [thread:$0]  %s548_s0, 512, %s17_s13, [#allocation3], %s470_s22, %s470_s22, %s471_s23  }
  0x13   :  { %s472_s26 = smov [#allocation5]   ;;  %s419_s30 = scalar_lea.hbm %s549_s1, 1216 }
  0x14   :  { %s28_s27 = sshll.u32 %s472_s26, 4  ;;  %p420_p8 = scmp.ne.s32.totalorder %s549_s1, %s419_s30  ;;  %s29_s27 = int_to_ptr.vmem [resolvable:$true] %s28_s27 }
  0x15   :  { %p423_p9 = scmp.lt.u32.totalorder %s419_s30, %s549_s1 }
  0x17   :  { %p425_p10 = pnand %p423_p9, %p420_p8 }
  0x19   :  { %428 = shalt.err (!%p425_p10)
}
  0x1a   :  { %s429_s8 = scalar_lea.vmem %s29_s27, 1216  ;;  %p434_p12 = scmp.lt.s32.totalorder %s29_s27, %s29_s27 }
  0x1b   :  { %p430_p11 = scmp.ne.s32.totalorder %s29_s27, %s429_s8  ;;  %p435_p13 = scmp.lt.s32.totalorder %s429_s8, %s429_s8 }
  0x1d   :  { %p436_p0 = por %p435_p13, %p434_p12 }
  0x1f   :  { %p437_p1 = pnand %p436_p0, %p430_p11 }
  0x21   :  { %440 = shalt.err (!%p437_p1)
}
  0x22   :  { %s473_s0 = smov 64   ;;  %s474_s9 = smov 4  }
  0x23   :  { %34 = dma.hbm_to_vmem [thread:$0]  %s549_s1, 1216, %s29_s27, [#allocation6], %s473_s0, %s473_s0, %s474_s9  }
  0x24   :  { %463 = dma.done.wait [#allocation3], 512  }
  0x25   :  { %464 = vsyncadd [#allocation3], 4294966784 }
  0x26   :  { %465 = dma.done.wait [#allocation6], 1216  }
  0x27   :  { %466 = vsyncadd [#allocation6], 4294966080  ;;  %v475_v0 = vmov 0   ;;  %v373_v1 = vld [vmem:[#allocation5] sm:$0xff]   ;;  %v374_v2 = vld [vmem:[#allocation5 + $0x8] sm:$0xff]   ;;  %vm147_vm0 = vcmask 154624   ;;  %v68_v19 = vlaneseq }
  0x28   :  { %161 = vmatprep.subr.bf16.mxu0 %v475_v0  ;;  %344 = vmatprep.subr.bf16.mxu1 %v475_v0  ;;  %v375_v3 = vld [vmem:[#allocation5 + $0x10] sm:$0xff]   ;;  %v376_v4 = vld [vmem:[#allocation5 + $0x18] sm:$0xff]   ;;  %v385_v5 = vld [vmem:[#allocation2 + $0x4] ss:$8 sps:$4 sm:$0xff]   ;;  %vm154_vm1 = vcmask 1040384   ;;  %vm155_vm2 = vcmask 1041408  }
  0x29   :  { %162 = vmatpush1.bf16.msra.mxu0 %v373_v1  ;;  %354 = vmatpush1.bf16.msra.mxu1 %v373_v1  ;;  %v388_v6 = vld [vmem:[#allocation2 + $0x14] ss:$8 sps:$4 sm:$0xff]   ;;  %v377_v7 = vld [vmem:[#allocation5 + $0x20] sm:$0xff]   ;;  %v378_v8 = vld [vmem:[#allocation5 + $0x28] sm:$0xff]   ;;  %v476_v11 = vmov 65535   ;;  %v525_v20 = vshrl.u32 %v68_v19, 7 }
  0x2a   :  { %163 = vmatprep.subr.bf16.mxu0 %v475_v0  ;;  %345 = vmatprep.subr.bf16.mxu1 %v475_v0  ;;  %v379_v9 = vld [vmem:[#allocation5 + $0x30] sm:$0xff]   ;;  %v380_v10 = vld [vmem:[#allocation5 + $0x38] sm:$0xff]   ;;  %v156_v12 = vsel %vm154_vm1, 4294967295, %v476_v11  ;;  %v381_v13 = vld [vmem:[#allocation5 + $0x40] sm:$0xff]  }
  0x2b   :  { %323 = vmatprep.mubr.msk.bf16.mxu0 %vm147_vm0, %v385_v5  ;;  %324 = vmatprep.mubr.msk.bf16.mxu1 %vm147_vm0, %v388_v6  ;;  %v382_v14 = vld [vmem:[#allocation5 + $0x48] ss:$0 sps:$4 sm:$0x33]   ;;  %v157_v15 = vsel %vm155_vm2, %v156_v12, 0  ;;  %v386_v18 = vld [vmem:[#allocation2 + $0x10] ss:$8 sps:$4 sm:$0xff]  }
  0x2c   :  { %v159_v16 = vand.u32 %v382_v14, %v157_v15  ;;  %v383_v17 = vld [vmem:[#allocation2] ss:$8 sps:$4 sm:$0xff]   ;;  %v70_v21 = vsub.s32 0, %v525_v20 }
  0x2d   :  { %164 = vmatpush1.bf16.msra.mxu0 %v374_v2  ;;  %355 = vmatpush1.bf16.msra.mxu1 %v374_v2  ;;  %v67_v22 = vld [vmem:[%s550_s2] sm:$0x7]  ;;  %s477_s2 = smov [#allocation7]  }
  0x2e   :  { %165 = vmatprep.subr.bf16.mxu0 %v475_v0  ;;  %346 = vmatprep.subr.bf16.mxu1 %v475_v0  ;;  %v71_v23 = vrot.slane %v67_v22, %v70_v21  ;;  %s296_s13 = sshll.u32 %s477_s2, 4  ;;  %s297_s13 = int_to_ptr.vmem [resolvable:$true] %s296_s13 }
  0x2f   :  { %s441_s14 = scalar_lea.vmem %s297_s13, 256  ;;  %p446_p3 = scmp.lt.s32.totalorder %s297_s13, %s297_s13 }
  0x30   :  { %p442_p2 = scmp.ne.s32.totalorder %s297_s13, %s441_s14  ;;  %p447_p4 = scmp.lt.s32.totalorder %s441_s14, %s441_s14 }
  0x31   :  { %166 = vmatpush1.bf16.msra.mxu0 %v375_v3  ;;  %356 = vmatpush1.bf16.msra.mxu1 %v375_v3  ;;  %v265_v3 = vsub.s32 2, %v525_v20 }
  0x32   :  { %167 = vmatprep.subr.bf16.mxu0 %v475_v0  ;;  %347 = vmatprep.subr.bf16.mxu1 %v475_v0  ;;  %p448_p5 = por %p447_p4, %p446_p3 }
  0x34   :  { %p449_p6 = pnand %p448_p5, %p442_p2 }
  0x35   :  { %168 = vmatpush1.bf16.msra.mxu0 %v376_v4  ;;  %357 = vmatpush1.bf16.msra.mxu1 %v376_v4 }
  0x36   :  { %169 = vmatprep.subr.bf16.mxu0 %v475_v0  ;;  %348 = vmatprep.subr.bf16.mxu1 %v475_v0 }
  0x39   :  { %170 = vmatpush1.bf16.msra.mxu0 %v377_v7  ;;  %358 = vmatpush1.bf16.msra.mxu1 %v377_v7  ;;  %v266_v7 = vrot.slane %v67_v22, %v265_v3 }
  0x3a   :  { %171 = vmatprep.subr.bf16.mxu0 %v475_v0  ;;  %349 = vmatprep.subr.bf16.mxu1 %v475_v0 }
  0x3d   :  { %172 = vmatpush1.bf16.msra.mxu0 %v378_v8  ;;  %359 = vmatpush1.bf16.msra.mxu1 %v378_v8 }
  0x3e   :  { %173 = vmatprep.subr.bf16.mxu0 %v475_v0  ;;  %350 = vmatprep.subr.bf16.mxu1 %v475_v0 }
  0x41   :  { %174 = vmatpush1.bf16.msra.mxu0 %v379_v9  ;;  %360 = vmatpush1.bf16.msra.mxu1 %v379_v9 }
  0x42   :  { %175 = vmatprep.subr.bf16.mxu0 %v475_v0  ;;  %351 = vmatprep.subr.bf16.mxu1 %v475_v0 }
  0x45   :  { %176 = vmatpush1.bf16.msra.mxu0 %v380_v10  ;;  %361 = vmatpush1.bf16.msra.mxu1 %v380_v10 }
  0x46   :  { %177 = vmatprep.subr.bf16.mxu0 %v475_v0  ;;  %352 = vmatprep.subr.bf16.mxu1 %v475_v0 }
  0x49   :  { %178 = vmatpush1.bf16.msra.mxu0 %v381_v13  ;;  %362 = vmatpush1.bf16.msra.mxu1 %v381_v13 }
  0x4a   :  { %179 = vmatprep.subr.bf16.mxu0 %v475_v0  ;;  %353 = vmatprep.subr.bf16.mxu1 %v475_v0  ;;  %v257_v0 = vsub.s32 1, %v525_v20 }
  0x4c   :  { %v258_v2 = vrot.slane %v67_v22, %v257_v0 }
  0x4d   :  { %180 = vmatpush1.bf16.msra.mxu0 %v159_v16  ;;  %363 = vmatpush1.bf16.msra.mxu1 %v159_v16 }
  0x50   :  { %194 = vmatmul.mubr.bf16.vlgmr.msra.gmra.mrb[0].mxu0 %v383_v17  ;;  %202 = vmatmul.mubr.bf16.vlgmr.msra.gmra.mrb[0].mxu1 %v386_v18 }
 0x123   :  { %v195_v24 = vpop.f32.mrb[0].mxu0  ;;  %v203_v25 = vpop.f32.mrb[0].mxu1 }
 0x124   :  { %v196_v26 = vadd.f32 %v195_v24, %v71_v23  ;;  %v204_v27 = vadd.f32 %v203_v25, %v71_v23  ;;  %v197_v28 = vpop.f32.mrb[1].mxu0  ;;  %v205_v29 = vpop.f32.mrb[1].mxu1 }
 0x125   :  { %v198_v30 = vpop.f32.mrb[2].mxu0  ;;  %v206_v31 = vpop.f32.mrb[2].mxu1 }
 0x126   :  { %v207_v32 = vadd.f32 %v206_v31, %v71_v23  ;;  %214 = vadd.xlane.f32.xlu1 %v204_v27  ;;  %v200_v33 = vpop.f32.mrb[3].mxu0  ;;  %210 = vadd.xlane.f32.xlu0 %v196_v26  ;;  %v208_v34 = vpop.f32.mrb[3].mxu1  ;;  %v199_v35 = vadd.f32 %v198_v30, %v71_v23 }
 0x12a   :  { %216 = vadd.xlane.f32.xlu1 %v207_v32  ;;  %212 = vadd.xlane.f32.xlu0 %v199_v35 }
 0x1b3   :  { %v215_v36 = vpop.xlane.xlu1 %214  ;;  %v211_v37 = vpop.xlane.xlu0 %210 }
 0x1b4   :  { %v221_v38 = vmul.f32 0.0078125, %v215_v36  ;;  %v219_v39 = vmul.f32 0.0078125, %v211_v37 }
 0x1b6   :  { %v223_v40 = vsub.f32 %v196_v26, %v219_v39  ;;  %v225_v43 = vsub.f32 %v204_v27, %v221_v38 }
 0x1b7   :  { %v217_v41 = vpop.xlane.xlu1 %216  ;;  %v213_v42 = vpop.xlane.xlu0 %212 }
 0x1b8   :  { %v222_v44 = vmul.f32 0.0078125, %v217_v41  ;;  %v220_v45 = vmul.f32 0.0078125, %v213_v42  ;;  %v227_v46 = vmul.f32 %v223_v40, %v223_v40  ;;  %v229_v49 = vmul.f32 %v225_v43, %v225_v43 }
 0x1ba   :  { %v224_v47 = vsub.f32 %v199_v35, %v220_v45  ;;  %231 = vadd.xlane.f32.xlu0 %v227_v46  ;;  %v226_v48 = vsub.f32 %v207_v32, %v222_v44 }
 0x1bc   :  { %v228_v50 = vmul.f32 %v224_v47, %v224_v47  ;;  %v230_v51 = vmul.f32 %v226_v48, %v226_v48 }
 0x1be   :  { %235 = vadd.xlane.f32.xlu0 %v229_v49  ;;  %233 = vadd.xlane.f32.xlu1 %v228_v50 }
 0x1c2   :  { %237 = vadd.xlane.f32.xlu1 %v230_v51 }
 0x247   :  { %v232_v52 = vpop.xlane.xlu0 %231 }
 0x248   :  { %v239_v53 = vmul.f32 0.0078125, %v232_v52 }
 0x24a   :  { %v243_v54 = vadd.f32 1e-05, %v239_v53 }
 0x24b   :  { %v234_v55 = vpop.xlane.xlu1 %233  ;;  %v236_v56 = vpop.xlane.xlu0 %235 }
 0x24c   :  { %389 = vrsqrt.f32 %v243_v54  ;;  %v240_v57 = vmul.f32 0.0078125, %v234_v55  ;;  %v241_v58 = vmul.f32 0.0078125, %v236_v56 }
 0x24e   :  { %v244_v59 = vadd.f32 1e-05, %v240_v57  ;;  %v245_v60 = vadd.f32 1e-05, %v241_v58 }
 0x24f   :  { %v238_v61 = vpop.xlane.xlu1 %237 }
 0x250   :  { %391 = vrsqrt.f32 %v244_v59  ;;  %v242_v62 = vmul.f32 0.0078125, %v238_v61 }
 0x251   :  { %393 = vrsqrt.f32 %v245_v60 }
 0x252   :  { %v246_v63 = vadd.f32 1e-05, %v242_v62 }
 0x254   :  { %395 = vrsqrt.f32 %v246_v63 }
 0x256   :  { %v390_v1 = vpop.eup %389 }
 0x257   :  { %v251_v4 = vmul.f32 %v390_v1, %v223_v40 }
 0x259   :  { %v259_v9 = vmul.f32 %v258_v2, %v251_v4 }
 0x25a   :  { %v392_v5 = vpop.eup %391 }
 0x25b   :  { %v394_v6 = vpop.eup %393  ;;  %v252_v8 = vmul.f32 %v392_v5, %v224_v47  ;;  %v267_v15 = vadd.f32 %v266_v7, %v259_v9 }
 0x25c   :  { %v253_v10 = vmul.f32 %v394_v6, %v225_v43 }
 0x25d   :  { %v260_v11 = vmul.f32 %v258_v2, %v252_v8 }
 0x25e   :  { %v396_v12 = vpop.eup %395  ;;  %v261_v14 = vmul.f32 %v258_v2, %v253_v10 }
 0x25f   :  { %v254_v13 = vmul.f32 %v396_v12, %v226_v48  ;;  %v268_v16 = vadd.f32 %v266_v7, %v260_v11 }
 0x260   :  { %v269_v19 = vadd.f32 %v266_v7, %v261_v14 }
 0x261   :  { %v262_v17 = vmul.f32 %v258_v2, %v254_v13  ;;  %v336_v18 = vpack.c.bf16 %v268_v16, %v267_v15 }
 0x263   :  { %v270_v21 = vadd.f32 %v266_v7, %v262_v17  ;;  %337 = vst [vmem:[#allocation7] sm:$0xff] %v336_v18  }
 0x265   :  { %v341_v20 = vpack.c.bf16 %v270_v21, %v269_v19 }
 0x267   :  { %343 = vst [vmem:[#allocation7 + $0x8] sm:$0xff] %v341_v20  }
 0x268   :  { %452 = shalt.err (!%p449_p6)
}
 0x269   :  { %s453_s17 = scalar_lea.hbm %s551_s3, 256 }
 0x26a   :  { %p454_p7 = scmp.ne.s32.totalorder %s551_s3, %s453_s17  ;;  %p457_p8 = scmp.lt.u32.totalorder %s453_s17, %s551_s3 }
 0x26c   :  { %p459_p9 = pnand %p457_p8, %p454_p7 }
 0x26e   :  { %462 = shalt.err (!%p459_p9)
}
 0x26f   :  { %302 = dma.vmem_to_hbm [thread:$0]  %s297_s13, 256, %s551_s3, [#allocation4], %s473_s0, %s473_s0, %s474_s9  }
 0x270   :  { %467 = dma.done.wait [#allocation4], 256  }
 0x271   :  { %468 = vsyncadd [#allocation4], 4294967040 }
 0x272   :  { %306 = vsyncpa [#allocation3], 1 }
 0x273   :  { %307 = vsyncpa [#allocation6], 1 }
 0x274   :  { %308 = vsyncpa [#allocation4], 1 }

</bundles_post_ra>
